<compile_context>
chip_gen: v6e
topology: v6e:2x2x1
jax: 0.10.0
libtpu: 0.0.40
codegen_flags: <defaults>
</compile_context>

<pallas_src>
import functools

import jax
import jax.numpy as jnp
from jax.experimental import pallas as pl
from jax.experimental.pallas import tpu as pltpu

LANE = 128
SUBLANE = 8


def _round_up(x, m):
    return ((x + m - 1) // m) * m


def _pick_tile(n, max_tile, granule):
    """Largest tile <= max_tile that divides n.

    Returns n itself when n <= max_tile (full-extent blocks are always legal). Otherwise returns
    the largest multiple-of-`granule` divisor of n, or None when n is not a multiple of `granule`
    (caller must pad n first)."""
    if n <= max_tile:
        return n
    if n % granule:
        return None
    t = (max_tile // granule) * granule
    while t >= granule:
        if n % t == 0:
            return t
        t -= granule
    return granule


def _bert_cls_kernel(h_ref, lbl_ref, w1_ref, b1_ref, w2_ref, b2_ref,
                     logits_ref, nll_ref, acc_ref,
                     *, inv_seq_len: float, labels_num: int):
    j = pl.program_id(1)

    # ---- streaming phase: accumulate the sequence-sum of this (bm, ts, H) tile in f32 ----
    @pl.when(j == 0)
    def _():
        acc_ref[...] = jnp.zeros_like(acc_ref)

    # accumulate-on-the-fly (no materialized f32 copy of the bf16/f32 tile)
    acc_ref[...] += jnp.sum(h_ref[...], axis=1, dtype=jnp.float32)        # [bm, Hpad]

    # ---- classification tail: once per batch tile, on the last sequence tile ----
    @pl.when(j == pl.num_programs(1) - 1)
    def _():
        bm = acc_ref.shape[0]
        l_pad = logits_ref.shape[1]

        # mean pooling: single scale by 1/S (true sequence length) of the running sum
        pooled = acc_ref[...] * inv_seq_len                               # [bm, Hpad]

        # output_layer_1 + tanh
        x = jnp.dot(pooled, w1_ref[...].astype(jnp.float32),
                    preferred_element_type=jnp.float32) + b1_ref[...]
        x = jnp.tanh(x)                                                   # [bm, Hpad]

        # output_layer_2 -> logits (lane-padded to l_pad; padded W2/b2 columns are zero)
        logits = jnp.dot(x, w2_ref[...].astype(jnp.float32),
                         preferred_element_type=jnp.float32) + b2_ref[...]
        logits_ref[...] = logits                                          # [bm, Lpad]

        # LogSoftmax(dim=-1) over the *valid* label columns only (f32, so -1e30 is safe)
        col = jax.lax.broadcasted_iota(jnp.int32, (bm, l_pad), 1)
        masked = jnp.where(col < labels_num, logits, jnp.float32(-1e30))
        m = jnp.max(masked, axis=-1, keepdims=True)
        shifted = masked - m
        lse = jnp.log(jnp.sum(jnp.exp(shifted), axis=-1, keepdims=True))
        logp = shifted - lse                                              # [bm, Lpad]

        # NLL per example via an in-kernel one-hot built from int32 labels.
        # Padded batch rows have label == -1 -> all-zero mask -> zero loss contribution.
        onehot = (col == lbl_ref[...]).astype(jnp.float32)                # [bm, Lpad]
        nll = -jnp.sum(logp * onehot, axis=-1, keepdims=True)             # [bm, 1]
        nll_ref[...] = jnp.broadcast_to(nll, (bm, LANE))                  # lane-dense store


def bert_classification_forward(last_hidden_state, w1, b1, w2, b2, label, labels_num,
                                *, bm_max=64, ts_max=128):
    """Returns (loss, logits) matching the PyTorch module's forward (pooling='mean')."""
    B, S, H = last_hidden_state.shape
    L = int(labels_num)
    dt = last_hidden_state.dtype
    itemsize = jnp.dtype(dt).itemsize

    Hpad = _round_up(H, LANE)                         # lane-dense hidden dim
    Lpad = _round_up(max(L, LANE), LANE)              # lane-dense logits / NLL outputs

    # --- sequence tiling: prefer a ts that divides S so no padded copy of h is needed ---
    ts = _pick_tile(S, ts_max, SUBLANE)
    Spad = S
    if ts is None:                                    # S > ts_max and not a multiple of 8
        Spad = _round_up(S, SUBLANE)
        ts = _pick_tile(Spad, ts_max, SUBLANE)

    # --- batch tiling ---
    bm = _pick_tile(B, bm_max, SUBLANE)
    Bpad = B
    if bm is None:                                    # B > bm_max and not a multiple of 8
        Bpad = _round_up(B, SUBLANE)
        bm = _pick_tile(Bpad, bm_max, SUBLANE)
    if Bpad // bm == 1 and bm % 16 == 0:
        bm //= 2                                      # give the 'parallel' axis >= 2 tiles (v7x)

    # --- VMEM-aware tile shrink + explicit scoped-VMEM limit (v5e/v6e/v7x aware) ---
    w_bytes = (Hpad * Hpad + Hpad + Hpad * Lpad + Lpad) * 4
    try:
        vmem_cap = int(pltpu.get_tpu_info().vmem_capacity_bytes)
    except Exception:
        vmem_cap = 64 << 20                           # conservative (v7x per-TensorCore VMEM)

    def vmem_need(bm_, ts_):
        return (2 * bm_ * ts_ * Hpad * itemsize       # double-buffered h stream
                + 2 * w_bytes                         # weights (worst case double-buffered)
                + 2 * bm_ * (Lpad + LANE) * 4         # lane-dense outputs
                + bm_ * Hpad * 4)                     # f32 pooled-sum accumulator

    budget = int(min(vmem_cap, 128 << 20) * 0.7)
    while vmem_need(bm, ts) > budget and ts % 16 == 0 and ts > SUBLANE:
        ts //= 2
    while vmem_need(bm, ts) > budget and bm % 16 == 0 and bm > SUBLANE:
        bm //= 2

    nb, ns = Bpad // bm, Spad // ts
    vmem_limit = int(min(max(vmem_need(bm, ts) + (8 << 20), 32 << 20), vmem_cap))

    # --- pad only when strictly required (common BERT shapes: no copy of h at all) ---
    if (Bpad, Spad, Hpad) != (B, S, H):
        h = jnp.zeros((Bpad, Spad, Hpad), dt).at[:B, :S, :H].set(last_hidden_state)
    else:
        h = last_hidden_state
    lbl = jnp.full((Bpad, 1), -1, jnp.int32).at[:B, 0].set(label.astype(jnp.int32))

    b1r = b1.reshape(1, -1)
    b2r = b2.reshape(1, -1)
    if Hpad != H:
        w1p = jnp.zeros((Hpad, Hpad), w1.dtype).at[:H, :H].set(w1)
        b1p = jnp.zeros((1, Hpad), b1.dtype).at[:, :H].set(b1r)
    else:
        w1p, b1p = w1, b1r
    if Hpad != H or Lpad != L:
        w2p = jnp.zeros((Hpad, Lpad), w2.dtype).at[:H, :L].set(w2)
        b2p = jnp.zeros((1, Lpad), b2.dtype).at[:, :L].set(b2r)
    else:
        w2p, b2p = w2, b2r

    kernel = functools.partial(_bert_cls_kernel, inv_seq_len=1.0 / S, labels_num=L)

    cost = pl.CostEstimate(
        flops=int(B * S * Hpad + 2 * B * Hpad * Hpad + 2 * B * Hpad * Lpad),
        transcendentals=int(B * (Hpad + Lpad)),
        bytes_accessed=int(Bpad * Spad * Hpad * itemsize + w_bytes
                           + Bpad * (Lpad + LANE) * 4),
    )

    def _call(single_buffer_weights):
        wkw = {"pipeline_mode": pl.Buffered(1)} if single_buffer_weights else {}
        grid_spec = pltpu.PrefetchScalarGridSpec(
            num_scalar_prefetch=0,
            grid=(nb, ns),
            in_specs=[
                pl.BlockSpec((bm, ts, Hpad), lambda i, j: (i, j, 0)),     # streamed hidden states
                pl.BlockSpec((bm, 1), lambda i, j: (i, 0)),               # int32 labels per tile
                pl.BlockSpec((Hpad, Hpad), lambda i, j: (0, 0), **wkw),   # W1: resident
                pl.BlockSpec((1, Hpad), lambda i, j: (0, 0), **wkw),      # b1
                pl.BlockSpec((Hpad, Lpad), lambda i, j: (0, 0), **wkw),   # W2
                pl.BlockSpec((1, Lpad), lambda i, j: (0, 0), **wkw),      # b2
            ],
            out_specs=(
                pl.BlockSpec((bm, Lpad), lambda i, j: (i, 0)),            # logits (lane-dense)
                pl.BlockSpec((bm, LANE), lambda i, j: (i, 0)),            # per-example NLL
            ),
            scratch_shapes=[pltpu.VMEM((bm, Hpad), jnp.float32)],         # pooled-sum accumulator
        )
        return pl.pallas_call(
            kernel,
            out_shape=(
                jax.ShapeDtypeStruct((Bpad, Lpad), jnp.float32),
                jax.ShapeDtypeStruct((Bpad, LANE), jnp.float32),
            ),
            grid_spec=grid_spec,
            compiler_params=pltpu.CompilerParams(
                dimension_semantics=("parallel", "arbitrary"),
                vmem_limit_bytes=vmem_limit),
            cost_estimate=cost,
        )(h, lbl, w1p, b1p, w2p, b2p)

    try:
        logits_pad, nll_pad = _call(True)
    except Exception:
        # Fallback for environments without BlockSpec(pipeline_mode=...) support.
        logits_pad, nll_pad = _call(False)

    logits = logits_pad[:B, :L]
    loss = jnp.sum(nll_pad[:B, 0]) / B               # NLLLoss mean reduction over the true batch
    return loss, logits


if __name__ == "__main__":
    # Small shapes consistent with the module's forward pass.
    B, S, H, L, VOCAB = 2, 8, 32, 4, 100

    key = jax.random.PRNGKey(0)
    k_emb, k_w1, k_b1, k_w2, k_b2, k_src, k_lbl = jax.random.split(key, 7)

    # Deterministic synthetic parameters (not a checkpoint). Linear weights stored [in, out].
    emb_table = jax.random.normal(k_emb, (VOCAB, H), dtype=jnp.float32) * 0.02
    w1 = jax.random.normal(k_w1, (H, H), dtype=jnp.float32) * 0.02   # output_layer_1
    b1 = jax.random.normal(k_b1, (1, H), dtype=jnp.float32) * 0.02
    w2 = jax.random.normal(k_w2, (H, L), dtype=jnp.float32) * 0.02   # output_layer_2
    b2 = jax.random.normal(k_b2, (1, L), dtype=jnp.float32) * 0.02

    # Inputs: src [B, S] input ids, label [B], attention_mask [B, S]
    src = jax.random.randint(k_src, (B, S), 0, VOCAB, dtype=jnp.int32)
    label = jax.random.randint(k_lbl, (B,), 0, L, dtype=jnp.int32)
    attention_mask = jnp.ones((B, S), dtype=jnp.int32)  # unused by mean pooling (matches reference)

    # Stand-in "transformer": deterministic embedding lookup -> last_hidden_state [B, S, H].
    last_hidden_state = emb_table[src]

    # --- f32 streaming path: exact parity with the pure-JAX reference ---
    loss, logits = bert_classification_forward(last_hidden_state, w1, b1, w2, b2, label, L)
    jax.block_until_ready((loss, logits))

    pooled_ref = jnp.mean(last_hidden_state, axis=1)
    x_ref = jnp.tanh(pooled_ref @ w1 + b1)
    logits_ref = x_ref @ w2 + b2
    logp_ref = jax.nn.log_softmax(logits_ref, axis=-1)
    loss_ref = -jnp.mean(logp_ref[jnp.arange(B), label])
    assert logits.shape == (B, L)
    assert jnp.allclose(logits, logits_ref, atol=1e-5), "logits mismatch (f32)"
    assert jnp.allclose(loss, loss_ref, atol=1e-5), "loss mismatch (f32)"

    # --- bf16 streaming path (production config: halves HBM traffic; f32 accumulation in-kernel) ---
    h_bf16 = last_hidden_state.astype(jnp.bfloat16)
    loss_b, logits_b = bert_classification_forward(h_bf16, w1, b1, w2, b2, label, L)
    jax.block_until_ready((loss_b, logits_b))

    pooled_b = jnp.mean(h_bf16.astype(jnp.float32), axis=1)
    x_b = jnp.tanh(pooled_b @ w1 + b1)
    logits_b_ref = x_b @ w2 + b2
    logp_b_ref = jax.nn.log_softmax(logits_b_ref, axis=-1)
    loss_b_ref = -jnp.mean(logp_b_ref[jnp.arange(B), label])
    assert jnp.allclose(logits_b, logits_b_ref, atol=1e-3), "logits mismatch (bf16 stream)"
    assert jnp.allclose(loss_b, loss_b_ref, atol=1e-3), "loss mismatch (bf16 stream)"

    print("KERNEL_OK")
</pallas_src>

<mosaic_0001>
module attributes {stable_mosaic.version = 11 : i64} {
  func.func @_bert_cls_kernel(%arg0: i32, %arg1: i32, %arg2: memref<2x8x128xf32, #tpu.memory_space<vmem>>, %arg3: memref<2x1xi32, #tpu.memory_space<vmem>>, %arg4: memref<128x128xf32, #tpu.memory_space<vmem>>, %arg5: memref<1x128xf32, #tpu.memory_space<vmem>>, %arg6: memref<128x128xf32, #tpu.memory_space<vmem>>, %arg7: memref<1x128xf32, #tpu.memory_space<vmem>>, %arg8: memref<2x128xf32, #tpu.memory_space<vmem>>, %arg9: memref<2x128xf32, #tpu.memory_space<vmem>>, %arg10: memref<2x128xf32, #tpu.memory_space<vmem>>) attributes {dimension_semantics = [#tpu.dimension_semantics<parallel>, #tpu.dimension_semantics<arbitrary>], iteration_bounds = array<i64: 1, 1>, scalar_prefetch = 0 : i64, scratch_operands = 1 : i64, tpu.core_type = #tpu.core_type<tc>, window_params = [{transform_indices = @transform_0, window_bounds = array<i64: 2, 8, 128>}, {transform_indices = @transform_1, window_bounds = array<i64: 2, 1>}, {pipeline_mode = #tpu.pipeline_mode<synchronous>, transform_indices = @transform_2, window_bounds = array<i64: 128, 128>}, {pipeline_mode = #tpu.pipeline_mode<synchronous>, transform_indices = @transform_3, window_bounds = array<i64: 1, 128>}, {pipeline_mode = #tpu.pipeline_mode<synchronous>, transform_indices = @transform_4, window_bounds = array<i64: 128, 128>}, {pipeline_mode = #tpu.pipeline_mode<synchronous>, transform_indices = @transform_5, window_bounds = array<i64: 1, 128>}, {transform_indices = @transform_6, window_bounds = array<i64: 2, 128>}, {transform_indices = @transform_7, window_bounds = array<i64: 2, 128>}]} {
    %c0_i32 = arith.constant 0 : i32
    %0 = arith.cmpi eq, %arg1, %c0_i32 : i32
    %1 = arith.extui %0 : i1 to i32
    %c0_i32_0 = arith.constant 0 : i32
    %2 = arith.cmpi ne, %1, %c0_i32_0 : i32
    scf.if %2 {
      %cst_9 = arith.constant 0.000000e+00 : f32
      %11 = vector.broadcast %cst_9 : f32 to vector<2x128xf32>
      %c0_10 = arith.constant 0 : index
      %c0_11 = arith.constant 0 : index
      %12 = vector.load %arg10[%c0_10, %c0_11] : memref<2x128xf32, #tpu.memory_space<vmem>>, vector<2x128xf32>
      tpu.vector_store %arg10[%c0_10, %c0_11], %11 {strides = array<i32>} : memref<2x128xf32, #tpu.memory_space<vmem>>, vector<2x128xf32>,
    } else {
    }
    %c0 = arith.constant 0 : index
    %c0_1 = arith.constant 0 : index
    %3 = vector.load %arg10[%c0, %c0_1] : memref<2x128xf32, #tpu.memory_space<vmem>>, vector<2x128xf32>
    %c0_2 = arith.constant 0 : index
    %c0_3 = arith.constant 0 : index
    %c0_4 = arith.constant 0 : index
    %4 = vector.load %arg2[%c0_2, %c0_3, %c0_4] : memref<2x8x128xf32, #tpu.memory_space<vmem>>, vector<2x8x128xf32>
    %cst = arith.constant dense<0.000000e+00> : vector<2x128xf32>
    %5 = vector.multi_reduction <add>, %4, %cst [1] : vector<2x8x128xf32> to vector<2x128xf32>
    %6 = arith.addf %3, %5 : vector<2x128xf32>
    %c0_5 = arith.constant 0 : index
    %c0_6 = arith.constant 0 : index
    %7 = vector.load %arg10[%c0_5, %c0_6] : memref<2x128xf32, #tpu.memory_space<vmem>>, vector<2x128xf32>
    tpu.vector_store %arg10[%c0_5, %c0_6], %6 {strides = array<i32>} : memref<2x128xf32, #tpu.memory_space<vmem>>, vector<2x128xf32>,
    %c0_i32_7 = arith.constant 0 : i32
    %8 = arith.cmpi eq, %arg1, %c0_i32_7 : i32
    %9 = arith.extui %8 : i1 to i32
    %c0_i32_8 = arith.constant 0 : i32
    %10 = arith.cmpi ne, %9, %c0_i32_8 : i32
    scf.if %10 {
      %c0_9 = arith.constant 0 : index
      %c0_10 = arith.constant 0 : index
      %11 = vector.load %arg10[%c0_9, %c0_10] : memref<2x128xf32, #tpu.memory_space<vmem>>, vector<2x128xf32>
      %cst_11 = arith.constant 1.250000e-01 : f32
      %12 = vector.broadcast %cst_11 : f32 to vector<2x128xf32>
      %13 = arith.mulf %11, %12 : vector<2x128xf32>
      %c0_12 = arith.constant 0 : index
      %c0_13 = arith.constant 0 : index
      %14 = vector.load %arg4[%c0_12, %c0_13] : memref<128x128xf32, #tpu.memory_space<vmem>>, vector<128x128xf32>
      %cst_14 = arith.constant dense<0.000000e+00> : vector<2x128xf32>
      %15 = tpu.matmul %13, %14, %cst_14 {dimension_numbers = #tpu.dot_dimension_numbers<[1], [0], [0], [1], [0, 0, 1, 1], [], []>} : vector<2x128xf32>, vector<128x128xf32>, vector<2x128xf32> -> vector<2x128xf32>
      %c0_15 = arith.constant 0 : index
      %c0_16 = arith.constant 0 : index
      %16 = vector.load %arg5[%c0_15, %c0_16] : memref<1x128xf32, #tpu.memory_space<vmem>>, vector<1x128xf32>
      %17 = vector.broadcast %16 : vector<1x128xf32> to vector<2x128xf32>
      %18 = arith.addf %15, %17 : vector<2x128xf32>
      %19 = math.tanh %18 : vector<2x128xf32>
      %c0_17 = arith.constant 0 : index
      %c0_18 = arith.constant 0 : index
      %20 = vector.load %arg6[%c0_17, %c0_18] : memref<128x128xf32, #tpu.memory_space<vmem>>, vector<128x128xf32>
      %cst_19 = arith.constant dense<0.000000e+00> : vector<2x128xf32>
      %21 = tpu.matmul %19, %20, %cst_19 {dimension_numbers = #tpu.dot_dimension_numbers<[1], [0], [0], [1], [0, 0, 1, 1], [], []>} : vector<2x128xf32>, vector<128x128xf32>, vector<2x128xf32> -> vector<2x128xf32>
      %c0_20 = arith.constant 0 : index
      %c0_21 = arith.constant 0 : index
      %22 = vector.load %arg7[%c0_20, %c0_21] : memref<1x128xf32, #tpu.memory_space<vmem>>, vector<1x128xf32>
      %23 = vector.broadcast %22 : vector<1x128xf32> to vector<2x128xf32>
      %24 = arith.addf %21, %23 : vector<2x128xf32>
      %c0_22 = arith.constant 0 : index
      %c0_23 = arith.constant 0 : index
      %25 = vector.load %arg8[%c0_22, %c0_23] : memref<2x128xf32, #tpu.memory_space<vmem>>, vector<2x128xf32>
      tpu.vector_store %arg8[%c0_22, %c0_23], %24 {strides = array<i32>} : memref<2x128xf32, #tpu.memory_space<vmem>>, vector<2x128xf32>,
      %26 = tpu.iota {dimensions = array<i32: 1>} : vector<2x128xi32>
      %c4_i32 = arith.constant 4 : i32
      %27 = vector.broadcast %c4_i32 : i32 to vector<2x128xi32>
      %28 = arith.cmpi slt, %26, %27 : vector<2x128xi32>
      %cst_24 = arith.constant -1.000000e+30 : f32
      %29 = vector.broadcast %cst_24 : f32 to vector<2x128xf32>
      %30 = arith.select %28, %24, %29 : vector<2x128xi1>, vector<2x128xf32>
      %cst_25 = arith.constant dense<0xFF800000> : vector<2xf32>
      %31 = vector.multi_reduction <maximumf>, %30, %cst_25 [1] : vector<2x128xf32> to vector<2xf32>
      %32 = vector.shape_cast %31 : vector<2xf32> to vector<2x1xf32>
      %33 = vector.broadcast %32 : vector<2x1xf32> to vector<2x128xf32>
      %34 = arith.subf %30, %33 : vector<2x128xf32>
      %35 = math.exp %34 : vector<2x128xf32>
      %cst_26 = arith.constant dense<0.000000e+00> : vector<2xf32>
      %36 = vector.multi_reduction <add>, %35, %cst_26 [1] : vector<2x128xf32> to vector<2xf32>
      %37 = vector.shape_cast %36 : vector<2xf32> to vector<2x1xf32>
      %38 = math.log %37 : vector<2x1xf32>
      %39 = vector.broadcast %38 : vector<2x1xf32> to vector<2x128xf32>
      %40 = arith.subf %34, %39 : vector<2x128xf32>
      %c0_27 = arith.constant 0 : index
      %c0_28 = arith.constant 0 : index
      %41 = vector.load %arg3[%c0_27, %c0_28] : memref<2x1xi32, #tpu.memory_space<vmem>>, vector<2x1xi32>
      %42 = vector.broadcast %41 : vector<2x1xi32> to vector<2x128xi32>
      %43 = arith.cmpi eq, %26, %42 : vector<2x128xi32>
      %44 = arith.extui %43 : vector<2x128xi1> to vector<2x128xi32>
      %45 = arith.sitofp %44 : vector<2x128xi32> to vector<2x128xf32>
      %46 = arith.mulf %40, %45 : vector<2x128xf32>
      %cst_29 = arith.constant dense<0.000000e+00> : vector<2xf32>
      %47 = vector.multi_reduction <add>, %46, %cst_29 [1] : vector<2x128xf32> to vector<2xf32>
      %48 = vector.shape_cast %47 : vector<2xf32> to vector<2x1xf32>
      %cst_30 = arith.constant 0.000000e+00 : f32
      %49 = vector.broadcast %cst_30 : f32 to vector<2x1xf32>
      %50 = arith.subf %49, %48 : vector<2x1xf32>
      %51 = vector.shape_cast %50 : vector<2x1xf32> to vector<2x1xf32>
      %52 = vector.broadcast %51 : vector<2x1xf32> to vector<2x128xf32>
      %c0_31 = arith.constant 0 : index
      %c0_32 = arith.constant 0 : index
      %53 = vector.load %arg9[%c0_31, %c0_32] : memref<2x128xf32, #tpu.memory_space<vmem>>, vector<2x128xf32>
      tpu.vector_store %arg9[%c0_31, %c0_32], %52 {strides = array<i32>} : memref<2x128xf32, #tpu.memory_space<vmem>>, vector<2x128xf32>,
    } else {
    }
    return
  }
  func.func @transform_0(%arg0: i32, %arg1: i32) -> (i32, i32, i32) {
    %c0_i32 = arith.constant 0 : i32
    %c0_i32_0 = arith.constant 0 : i32
    return %arg0, %arg1, %c0_i32 : i32, i32, i32
  }
  func.func @transform_1(%arg0: i32, %arg1: i32) -> (i32, i32) {
    %c0_i32 = arith.constant 0 : i32
    %c0_i32_0 = arith.constant 0 : i32
    return %arg0, %c0_i32 : i32, i32
  }
  func.func @transform_2(%arg0: i32, %arg1: i32) -> (i32, i32) {
    %c0_i32 = arith.constant 0 : i32
    %c0_i32_0 = arith.constant 0 : i32
    %c0_i32_1 = arith.constant 0 : i32
    return %c0_i32, %c0_i32_0 : i32, i32
  }
  func.func @transform_3(%arg0: i32, %arg1: i32) -> (i32, i32) {
    %c0_i32 = arith.constant 0 : i32
    %c0_i32_0 = arith.constant 0 : i32
    %c0_i32_1 = arith.constant 0 : i32
    return %c0_i32, %c0_i32_0 : i32, i32
  }
  func.func @transform_4(%arg0: i32, %arg1: i32) -> (i32, i32) {
    %c0_i32 = arith.constant 0 : i32
    %c0_i32_0 = arith.constant 0 : i32
    %c0_i32_1 = arith.constant 0 : i32
    return %c0_i32, %c0_i32_0 : i32, i32
  }
  func.func @transform_5(%arg0: i32, %arg1: i32) -> (i32, i32) {
    %c0_i32 = arith.constant 0 : i32
    %c0_i32_0 = arith.constant 0 : i32
    %c0_i32_1 = arith.constant 0 : i32
    return %c0_i32, %c0_i32_0 : i32, i32
  }
  func.func @transform_6(%arg0: i32, %arg1: i32) -> (i32, i32) {
    %c0_i32 = arith.constant 0 : i32
    %c0_i32_0 = arith.constant 0 : i32
    return %arg0, %c0_i32 : i32, i32
  }
  func.func @transform_7(%arg0: i32, %arg1: i32) -> (i32, i32) {
    %c0_i32 = arith.constant 0 : i32
    %c0_i32_0 = arith.constant 0 : i32
    return %arg0, %c0_i32 : i32, i32
  }
}

module attributes {stable_mosaic.version = 11 : i64} {
  func.func @_bert_cls_kernel(%arg0: i32, %arg1: i32, %arg2: memref<2x8x128xf32, #tpu.memory_space<vmem>>, %arg3: memref<2x1xi32, #tpu.memory_space<vmem>>, %arg4: memref<128x128xf32, #tpu.memory_space<vmem>>, %arg5: memref<1x128xf32, #tpu.memory_space<vmem>>, %arg6: memref<128x128xf32, #tpu.memory_space<vmem>>, %arg7: memref<1x128xf32, #tpu.memory_space<vmem>>, %arg8: memref<2x128xf32, #tpu.memory_space<vmem>>, %arg9: memref<2x128xf32, #tpu.memory_space<vmem>>, %arg10: memref<2x128xf32, #tpu.memory_space<vmem>>) attributes {dimension_semantics = [#tpu.dimension_semantics<parallel>, #tpu.dimension_semantics<arbitrary>], iteration_bounds = array<i64: 1, 1>, scalar_prefetch = 0 : i64, scratch_operands = 1 : i64, tpu.core_type = #tpu.core_type<tc>, window_params = [{transform_indices = @transform_0, window_bounds = array<i64: 2, 8, 128>}, {transform_indices = @transform_1, window_bounds = array<i64: 2, 1>}, {pipeline_mode = #tpu.pipeline_mode<synchronous>, transform_indices = @transform_2, window_bounds = array<i64: 128, 128>}, {pipeline_mode = #tpu.pipeline_mode<synchronous>, transform_indices = @transform_3, window_bounds = array<i64: 1, 128>}, {pipeline_mode = #tpu.pipeline_mode<synchronous>, transform_indices = @transform_4, window_bounds = array<i64: 128, 128>}, {pipeline_mode = #tpu.pipeline_mode<synchronous>, transform_indices = @transform_5, window_bounds = array<i64: 1, 128>}, {transform_indices = @transform_6, window_bounds = array<i64: 2, 128>}, {transform_indices = @transform_7, window_bounds = array<i64: 2, 128>}]} {
    %c0_i32 = arith.constant 0 : i32
    %0 = arith.cmpi eq, %arg1, %c0_i32 : i32
    %1 = arith.extui %0 : i1 to i32
    %c0_i32_0 = arith.constant 0 : i32
    %2 = arith.cmpi ne, %1, %c0_i32_0 : i32
    scf.if %2 {
      %cst_9 = arith.constant 0.000000e+00 : f32
      %11 = vector.broadcast %cst_9 : f32 to vector<2x128xf32>
      %c0_10 = arith.constant 0 : index
      %c0_11 = arith.constant 0 : index
      %12 = vector.load %arg10[%c0_10, %c0_11] : memref<2x128xf32, #tpu.memory_space<vmem>>, vector<2x128xf32>
      tpu.vector_store %arg10[%c0_10, %c0_11], %11 {strides = array<i32>} : memref<2x128xf32, #tpu.memory_space<vmem>>, vector<2x128xf32>,
    } else {
    }
    %c0 = arith.constant 0 : index
    %c0_1 = arith.constant 0 : index
    %3 = vector.load %arg10[%c0, %c0_1] : memref<2x128xf32, #tpu.memory_space<vmem>>, vector<2x128xf32>
    %c0_2 = arith.constant 0 : index
    %c0_3 = arith.constant 0 : index
    %c0_4 = arith.constant 0 : index
    %4 = vector.load %arg2[%c0_2, %c0_3, %c0_4] : memref<2x8x128xf32, #tpu.memory_space<vmem>>, vector<2x8x128xf32>
    %cst = arith.constant dense<0.000000e+00> : vector<2x128xf32>
    %5 = vector.multi_reduction <add>, %4, %cst [1] : vector<2x8x128xf32> to vector<2x128xf32>
    %6 = arith.addf %3, %5 : vector<2x128xf32>
    %c0_5 = arith.constant 0 : index
    %c0_6 = arith.constant 0 : index
    %7 = vector.load %arg10[%c0_5, %c0_6] : memref<2x128xf32, #tpu.memory_space<vmem>>, vector<2x128xf32>
    tpu.vector_store %arg10[%c0_5, %c0_6], %6 {strides = array<i32>} : memref<2x128xf32, #tpu.memory_space<vmem>>, vector<2x128xf32>,
    %c0_i32_7 = arith.constant 0 : i32
    %8 = arith.cmpi eq, %arg1, %c0_i32_7 : i32
    %9 = arith.extui %8 : i1 to i32
    %c0_i32_8 = arith.constant 0 : i32
    %10 = arith.cmpi ne, %9, %c0_i32_8 : i32
    scf.if %10 {
      %c0_9 = arith.constant 0 : index
      %c0_10 = arith.constant 0 : index
      %11 = vector.load %arg10[%c0_9, %c0_10] : memref<2x128xf32, #tpu.memory_space<vmem>>, vector<2x128xf32>
      %cst_11 = arith.constant 1.250000e-01 : f32
      %12 = vector.broadcast %cst_11 : f32 to vector<2x128xf32>
      %13 = arith.mulf %11, %12 : vector<2x128xf32>
      %c0_12 = arith.constant 0 : index
      %c0_13 = arith.constant 0 : index
      %14 = vector.load %arg4[%c0_12, %c0_13] : memref<128x128xf32, #tpu.memory_space<vmem>>, vector<128x128xf32>
      %cst_14 = arith.constant dense<0.000000e+00> : vector<2x128xf32>
      %15 = tpu.matmul %13, %14, %cst_14 {dimension_numbers = #tpu.dot_dimension_numbers<[1], [0], [0], [1], [0, 0, 1, 1], [], []>} : vector<2x128xf32>, vector<128x128xf32>, vector<2x128xf32> -> vector<2x128xf32>
      %c0_15 = arith.constant 0 : index
      %c0_16 = arith.constant 0 : index
      %16 = vector.load %arg5[%c0_15, %c0_16] : memref<1x128xf32, #tpu.memory_space<vmem>>, vector<1x128xf32>
      %17 = vector.broadcast %16 : vector<1x128xf32> to vector<2x128xf32>
      %18 = arith.addf %15, %17 : vector<2x128xf32>
      %19 = math.tanh %18 : vector<2x128xf32>
      %c0_17 = arith.constant 0 : index
      %c0_18 = arith.constant 0 : index
      %20 = vector.load %arg6[%c0_17, %c0_18] : memref<128x128xf32, #tpu.memory_space<vmem>>, vector<128x128xf32>
      %cst_19 = arith.constant dense<0.000000e+00> : vector<2x128xf32>
      %21 = tpu.matmul %19, %20, %cst_19 {dimension_numbers = #tpu.dot_dimension_numbers<[1], [0], [0], [1], [0, 0, 1, 1], [], []>} : vector<2x128xf32>, vector<128x128xf32>, vector<2x128xf32> -> vector<2x128xf32>
      %c0_20 = arith.constant 0 : index
      %c0_21 = arith.constant 0 : index
      %22 = vector.load %arg7[%c0_20, %c0_21] : memref<1x128xf32, #tpu.memory_space<vmem>>, vector<1x128xf32>
      %23 = vector.broadcast %22 : vector<1x128xf32> to vector<2x128xf32>
      %24 = arith.addf %21, %23 : vector<2x128xf32>
      %c0_22 = arith.constant 0 : index
      %c0_23 = arith.constant 0 : index
      %25 = vector.load %arg8[%c0_22, %c0_23] : memref<2x128xf32, #tpu.memory_space<vmem>>, vector<2x128xf32>
      tpu.vector_store %arg8[%c0_22, %c0_23], %24 {strides = array<i32>} : memref<2x128xf32, #tpu.memory_space<vmem>>, vector<2x128xf32>,
      %26 = tpu.iota {dimensions = array<i32: 1>} : vector<2x128xi32>
      %c4_i32 = arith.constant 4 : i32
      %27 = vector.broadcast %c4_i32 : i32 to vector<2x128xi32>
      %28 = arith.cmpi slt, %26, %27 : vector<2x128xi32>
      %cst_24 = arith.constant -1.000000e+30 : f32
      %29 = vector.broadcast %cst_24 : f32 to vector<2x128xf32>
      %30 = arith.select %28, %24, %29 : vector<2x128xi1>, vector<2x128xf32>
      %cst_25 = arith.constant dense<0xFF800000> : vector<2xf32>
      %31 = vector.multi_reduction <maximumf>, %30, %cst_25 [1] : vector<2x128xf32> to vector<2xf32>
      %32 = vector.shape_cast %31 : vector<2xf32> to vector<2x1xf32>
      %33 = vector.broadcast %32 : vector<2x1xf32> to vector<2x128xf32>
      %34 = arith.subf %30, %33 : vector<2x128xf32>
      %35 = math.exp %34 : vector<2x128xf32>
      %cst_26 = arith.constant dense<0.000000e+00> : vector<2xf32>
      %36 = vector.multi_reduction <add>, %35, %cst_26 [1] : vector<2x128xf32> to vector<2xf32>
      %37 = vector.shape_cast %36 : vector<2xf32> to vector<2x1xf32>
      %38 = math.log %37 : vector<2x1xf32>
      %39 = vector.broadcast %38 : vector<2x1xf32> to vector<2x128xf32>
      %40 = arith.subf %34, %39 : vector<2x128xf32>
      %c0_27 = arith.constant 0 : index
      %c0_28 = arith.constant 0 : index
      %41 = vector.load %arg3[%c0_27, %c0_28] : memref<2x1xi32, #tpu.memory_space<vmem>>, vector<2x1xi32>
      %42 = vector.broadcast %41 : vector<2x1xi32> to vector<2x128xi32>
      %43 = arith.cmpi eq, %26, %42 : vector<2x128xi32>
      %44 = arith.extui %43 : vector<2x128xi1> to vector<2x128xi32>
      %45 = arith.sitofp %44 : vector<2x128xi32> to vector<2x128xf32>
      %46 = arith.mulf %40, %45 : vector<2x128xf32>
      %cst_29 = arith.constant dense<0.000000e+00> : vector<2xf32>
      %47 = vector.multi_reduction <add>, %46, %cst_29 [1] : vector<2x128xf32> to vector<2xf32>
      %48 = vector.shape_cast %47 : vector<2xf32> to vector<2x1xf32>
      %cst_30 = arith.constant 0.000000e+00 : f32
      %49 = vector.broadcast %cst_30 : f32 to vector<2x1xf32>
      %50 = arith.subf %49, %48 : vector<2x1xf32>
      %51 = vector.shape_cast %50 : vector<2x1xf32> to vector<2x1xf32>
      %52 = vector.broadcast %51 : vector<2x1xf32> to vector<2x128xf32>
      %c0_31 = arith.constant 0 : index
      %c0_32 = arith.constant 0 : index
      %53 = vector.load %arg9[%c0_31, %c0_32] : memref<2x128xf32, #tpu.memory_space<vmem>>, vector<2x128xf32>
      tpu.vector_store %arg9[%c0_31, %c0_32], %52 {strides = array<i32>} : memref<2x128xf32, #tpu.memory_space<vmem>>, vector<2x128xf32>,
    } else {
    }
    return
  }
  func.func @transform_0(%arg0: i32, %arg1: i32) -> (i32, i32, i32) {
    %c0_i32 = arith.constant 0 : i32
    %c0_i32_0 = arith.constant 0 : i32
    return %arg0, %arg1, %c0_i32 : i32, i32, i32
  }
  func.func @transform_1(%arg0: i32, %arg1: i32) -> (i32, i32) {
    %c0_i32 = arith.constant 0 : i32
    %c0_i32_0 = arith.constant 0 : i32
    return %arg0, %c0_i32 : i32, i32
  }
  func.func @transform_2(%arg0: i32, %arg1: i32) -> (i32, i32) {
    %c0_i32 = arith.constant 0 : i32
    %c0_i32_0 = arith.constant 0 : i32
    %c0_i32_1 = arith.constant 0 : i32
    return %c0_i32, %c0_i32_0 : i32, i32
  }
  func.func @transform_3(%arg0: i32, %arg1: i32) -> (i32, i32) {
    %c0_i32 = arith.constant 0 : i32
    %c0_i32_0 = arith.constant 0 : i32
    %c0_i32_1 = arith.constant 0 : i32
    return %c0_i32, %c0_i32_0 : i32, i32
  }
  func.func @transform_4(%arg0: i32, %arg1: i32) -> (i32, i32) {
    %c0_i32 = arith.constant 0 : i32
    %c0_i32_0 = arith.constant 0 : i32
    %c0_i32_1 = arith.constant 0 : i32
    return %c0_i32, %c0_i32_0 : i32, i32
  }
  func.func @transform_5(%arg0: i32, %arg1: i32) -> (i32, i32) {
    %c0_i32 = arith.constant 0 : i32
    %c0_i32_0 = arith.constant 0 : i32
    %c0_i32_1 = arith.constant 0 : i32
    return %c0_i32, %c0_i32_0 : i32, i32
  }
  func.func @transform_6(%arg0: i32, %arg1: i32) -> (i32, i32) {
    %c0_i32 = arith.constant 0 : i32
    %c0_i32_0 = arith.constant 0 : i32
    return %arg0, %c0_i32 : i32, i32
  }
  func.func @transform_7(%arg0: i32, %arg1: i32) -> (i32, i32) {
    %c0_i32 = arith.constant 0 : i32
    %c0_i32_0 = arith.constant 0 : i32
    return %arg0, %c0_i32 : i32, i32
  }
}

</mosaic_0001>

<bundles_post_ra>
// kernel: tpu_custom_call.1
= control target key start
LH: loop header
LB: loop body
LE: loop exit
PB: predicated region body
PF: predicated region fallthrough
CT: control target
= control target key end

     0   :  { %13 = vsyncpa [#allocation4], 0  ;;  %s694_s0 = inlined_call_operand.hbm [shape: f32[2,8,128], index: 0, kind: input, shape index: {}]   ;;  %s695_s1 = inlined_call_operand.vmem [shape: s32[2,1], index: 1, kind: input, shape index: {}]   ;;  %s696_s2 = inlined_call_operand.hbm [shape: f32[128,128], index: 2, kind: input, shape index: {}]   ;;  %s697_s3 = inlined_call_operand.vmem [shape: f32[1,128], index: 3, kind: input, shape index: {}]   ;;  %s698_s4 = inlined_call_operand.hbm [shape: f32[128,128], index: 4, kind: input, shape index: {}]   ;;  %s699_s5 = inlined_call_operand.vmem [shape: f32[1,128], index: 5, kind: input, shape index: {}]   ;;  %s700_s6 = inlined_call_operand.hbm [shape: f32[2,128], index: 6, kind: output, shape index: {0}]   ;;  %s701_s7 = inlined_call_operand.hbm [shape: f32[2,128], index: 7, kind: output, shape index: {1}]  }
   0x1   :  { %14 = vsyncpa [#allocation7], 0 }
   0x2   :  { %15 = vsyncpa [#allocation5], 0 }
   0x3   :  { %16 = vsyncpa [#allocation11], 0  ;;  %s581_s24 = smov [#allocation6]   ;;  %s582_s26 = smov [#allocation3]  }
   0x4   :  { %s36_s25 = sshll.u32 %s581_s24, 4  ;;  %s22_s27 = sshll.u32 %s582_s26, 4  ;;  %s37_s25 = int_to_ptr.vmem [resolvable:$true] %s36_s25  ;;  %s23_s27 = int_to_ptr.vmem [resolvable:$true] %s22_s27 }
   0x5   :  { %s481_s28 = scalar_lea.vmem %s37_s25, 2048  ;;  %p486_p1 = scmp.lt.s32.totalorder %s37_s25, %s37_s25 }
   0x6   :  { %p482_p0 = scmp.ne.s32.totalorder %s37_s25, %s481_s28  ;;  %p487_p2 = scmp.lt.s32.totalorder %s481_s28, %s481_s28 }
   0x8   :  { %p488_p3 = por %p487_p2, %p486_p1 }
   0xa   :  { %p489_p4 = pnand %p488_p3, %p482_p0 }
   0xc   :  { %492 = shalt.err (!%p489_p4)
}
   0xd   :  { %s583_s29 = smov 128   ;;  %s584_s30 = smov 8  }
   0xe   :  { %42 = dma.hbm_to_vmem [thread:$0]  %s696_s2, 2048, %s37_s25, [#allocation7], %s583_s29, %s583_s29, %s584_s30  }
   0xf   :  { %s501_s10 = scalar_lea.vmem %s23_s27, 256  ;;  %p506_p6 = scmp.lt.s32.totalorder %s23_s27, %s23_s27 }
  0x10   :  { %p502_p5 = scmp.ne.s32.totalorder %s23_s27, %s501_s10  ;;  %p507_p7 = scmp.lt.s32.totalorder %s501_s10, %s501_s10 }
  0x12   :  { %p508_p8 = por %p507_p7, %p506_p6 }
  0x14   :  { %p509_p9 = pnand %p508_p8, %p502_p5 }
  0x16   :  { %512 = shalt.err (!%p509_p9)
}
  0x17   :  { %28 = dma.hbm_to_vmem [thread:$0]  %s694_s0, 256, %s23_s27, [#allocation4], %s583_s29, %s583_s29, %s584_s30  }
  0x18   :  { %s585_s13 = smov [#allocation8]  }
  0x19   :  { %s50_s14 = sshll.u32 %s585_s13, 4  ;;  %s51_s14 = int_to_ptr.vmem [resolvable:$true] %s50_s14 }
  0x1a   :  { %s521_s15 = scalar_lea.vmem %s51_s14, 2048  ;;  %p526_p11 = scmp.lt.s32.totalorder %s51_s14, %s51_s14 }
  0x1b   :  { %p522_p10 = scmp.ne.s32.totalorder %s51_s14, %s521_s15  ;;  %p527_p12 = scmp.lt.s32.totalorder %s521_s15, %s521_s15 }
  0x1d   :  { %p528_p13 = por %p527_p12, %p526_p11 }
  0x1f   :  { %p529_p0 = pnand %p528_p13, %p522_p10 }
  0x21   :  { %532 = shalt.err (!%p529_p0)
}
  0x22   :  { %56 = dma.hbm_to_vmem [thread:$0]  %s698_s4, 2048, %s51_s14, [#allocation7], %s583_s29, %s583_s29, %s584_s30  }
  0x23   :  { %573 = dma.done.wait [#allocation4], 256  }
  0x24   :  { %574 = vsyncadd [#allocation4], 4294967040 }
  0x25   :  { %575 = dma.done.wait [#allocation7], 4096  }
  0x26   :  { %576 = vsyncadd [#allocation7], 4294963200  ;;  %v586_v0 = vmov 0.0   ;;  %vm587_vm0 = vmmov 0   ;;  %v115_v1 = vld [vmem:[#allocation6 + $0x78] sm:$0xff]  ;;  %v114_v2 = vld [vmem:[#allocation6 + $0x70] sm:$0xff]  ;;  %v288_v57 = vlaneseq }
  0x27   :  { %385 = vmatprep.subr.mxu0 %v586_v0  ;;  %72 = vst [vmem:[#allocation2] sm:$0x3] %v586_v0  ;;  %417 = vmatprep.mubr.msk.f32.mxu0 %vm587_vm0, %v586_v0  ;;  %v113_v3 = vld [vmem:[#allocation6 + $0x68] sm:$0xff]  ;;  %v112_v4 = vld [vmem:[#allocation6 + $0x60] sm:$0xff]  ;;  %v111_v5 = vld [vmem:[#allocation6 + $0x58] sm:$0xff]  ;;  %vm90_vm1 = vcmask 1041409  }
  0x28   :  { %420 = vmatprep.subr.mxu1 %v586_v0  ;;  %452 = vmatprep.mubr.msk.f32.mxu1 %vm587_vm0, %v586_v0  ;;  %v74_v6 = vld [vmem:[#allocation3] sm:$0xff]  ;;  %v75_v7 = vld [vmem:[#allocation3 + $0x8] sm:$0xff]  ;;  %v207_v14 = vld [vmem:[#allocation8 + $0x68] sm:$0xff]  ;;  %v289_v58 = vand.u32 127, %v288_v57  ;;  %vm292_vm3 = vcmask 1041408  }
  0x29   :  { %386 = vmatpush3.msra.mxu0 %v115_v1  ;;  %v76_v8 = vrot.slane %v74_v6, 4  ;;  %v209_v9 = vld [vmem:[#allocation8 + $0x78] sm:$0xff]  ;;  %v208_v10 = vld [vmem:[#allocation8 + $0x70] sm:$0xff]  ;;  %v82_v11 = vrot.slane %v75_v7, 4  ;;  %v109_v16 = vld [vmem:[#allocation6 + $0x48] sm:$0xff] }
  0x2a   :  { %387 = vmatprep.subr.mxu0 %v586_v0  ;;  %421 = vmatpush3.msra.mxu1 %v209_v9  ;;  %v110_v12 = vld [vmem:[#allocation6 + $0x50] sm:$0xff]  ;;  %v206_v18 = vld [vmem:[#allocation8 + $0x60] sm:$0xff]  ;;  %v205_v22 = vld [vmem:[#allocation8 + $0x58] sm:$0xff]  ;;  %vm290_vm2 = vcmp.lt.s32.totalorder %v289_v58, 4 }
  0x2b   :  { %388 = vmatpush3.msra.mxu0 %v114_v2  ;;  %v77_v13 = vadd.f32 %v76_v8, %v74_v6  ;;  %422 = vmatprep.subr.mxu1 %v586_v0  ;;  %v83_v15 = vadd.f32 %v82_v11, %v75_v7  ;;  %v108_v20 = vld [vmem:[#allocation6 + $0x40] sm:$0xff]  ;;  %v107_v24 = vld [vmem:[#allocation6 + $0x38] sm:$0xff]  ;;  %v204_v26 = vld [vmem:[#allocation8 + $0x50] sm:$0xff] }
  0x2c   :  { %389 = vmatprep.subr.mxu0 %v586_v0  ;;  %423 = vmatpush3.msra.mxu1 %v208_v10  ;;  %v106_v28 = vld [vmem:[#allocation6 + $0x30] sm:$0xff]  ;;  %v203_v30 = vld [vmem:[#allocation8 + $0x48] sm:$0xff]  ;;  %v104_v35 = vld [vmem:[#allocation6 + $0x20] sm:$0xff] }
  0x2d   :  { %390 = vmatpush3.msra.mxu0 %v113_v3  ;;  %v78_v17 = vrot.slane %v77_v13, 2  ;;  %424 = vmatprep.subr.mxu1 %v586_v0  ;;  %v84_v19 = vrot.slane %v83_v15, 2  ;;  %v105_v33 = vld [vmem:[#allocation6 + $0x28] sm:$0xff]  ;;  %v103_v37 = vld [vmem:[#allocation6 + $0x18] sm:$0xff]  ;;  %v102_v38 = vld [vmem:[#allocation6 + $0x10] sm:$0xff]  ;;  %v588_v3 = vmov 0  }
  0x2e   :  { %391 = vmatprep.subr.mxu0 %v586_v0  ;;  %425 = vmatpush3.msra.mxu1 %v207_v14  ;;  %v73_v31 = vld [vmem:[#allocation2] sm:$0x3]  ;;  %v100_v40 = vld [vmem:[#allocation6] sm:$0xff]  ;;  %v201_v44 = vld [vmem:[#allocation8 + $0x38] sm:$0xff] }
  0x2f   :  { %392 = vmatpush3.msra.mxu0 %v112_v4  ;;  %v79_v21 = vadd.f32 %v78_v17, %v77_v13  ;;  %426 = vmatprep.subr.mxu1 %v586_v0  ;;  %v85_v23 = vadd.f32 %v84_v19, %v83_v15  ;;  %v101_v39 = vld [vmem:[#allocation6 + $0x8] sm:$0xff]  ;;  %v202_v43 = vld [vmem:[#allocation8 + $0x40] sm:$0xff]  ;;  %v200_v45 = vld [vmem:[#allocation8 + $0x30] sm:$0xff] }
  0x30   :  { %393 = vmatprep.subr.mxu0 %v586_v0  ;;  %427 = vmatpush3.msra.mxu1 %v206_v18  ;;  %v199_v46 = vld [vmem:[#allocation8 + $0x28] sm:$0xff]  ;;  %v198_v47 = vld [vmem:[#allocation8 + $0x20] sm:$0xff]  ;;  %v197_v48 = vld [vmem:[#allocation8 + $0x18] sm:$0xff] }
  0x31   :  { %394 = vmatpush3.msra.mxu0 %v111_v5  ;;  %v80_v25 = vrot.slane %v79_v21, 1  ;;  %428 = vmatprep.subr.mxu1 %v586_v0  ;;  %v86_v27 = vrot.slane %v85_v23, 1  ;;  %v196_v49 = vld [vmem:[#allocation8 + $0x10] sm:$0xff]  ;;  %v195_v50 = vld [vmem:[#allocation8 + $0x8] sm:$0xff]  ;;  %v194_v51 = vld [vmem:[#allocation8] sm:$0xff] }
  0x32   :  { %395 = vmatprep.subr.mxu0 %v586_v0  ;;  %429 = vmatpush3.msra.mxu1 %v205_v22  ;;  %v348_v52 = vld [vmem:[%s697_s3] ss:$0 sm:$0xff] }
  0x33   :  { %396 = vmatpush3.msra.mxu0 %v110_v12  ;;  %v81_v29 = vadd.f32 %v80_v25, %v79_v21  ;;  %430 = vmatprep.subr.mxu1 %v586_v0  ;;  %v87_v32 = vadd.f32 %v86_v27, %v85_v23  ;;  %v349_v59 = vld [vmem:[%s699_s5] ss:$0 sm:$0xff] }
  0x34   :  { %397 = vmatprep.subr.mxu0 %v586_v0  ;;  %431 = vmatpush3.msra.mxu1 %v204_v26  ;;  %v305_v2 = vld [vmem:[%s695_s1] sm:$0x3]  ;;  %s589_s1 = smov [#allocation9]  }
  0x35   :  { %398 = vmatpush3.msra.mxu0 %v109_v16  ;;  %432 = vmatprep.subr.mxu1 %v586_v0  ;;  %v91_v34 = vsel %vm90_vm1, %v87_v32, %v81_v29  ;;  %s324_s5 = sshll.u32 %s589_s1, 4  ;;  %s325_s5 = int_to_ptr.vmem [resolvable:$true] %s324_s5 }
  0x36   :  { %399 = vmatprep.subr.mxu0 %v586_v0  ;;  %433 = vmatpush3.msra.mxu1 %v203_v30  ;;  %v93_v36 = vadd.f32 %v91_v34, %v73_v31  ;;  %s533_s20 = scalar_lea.vmem %s325_s5, 32  ;;  %p538_p2 = scmp.lt.s32.totalorder %s325_s5, %s325_s5 }
  0x37   :  { %400 = vmatpush3.msra.mxu0 %v108_v20  ;;  %434 = vmatprep.subr.mxu1 %v586_v0  ;;  %p534_p1 = scmp.ne.s32.totalorder %s325_s5, %s533_s20  ;;  %p539_p3 = scmp.lt.s32.totalorder %s533_s20, %s533_s20 }
  0x38   :  { %401 = vmatprep.subr.mxu0 %v586_v0  ;;  %94 = vst [vmem:[#allocation2] sm:$0x3] %v93_v36  ;;  %435 = vmatpush3.msra.mxu1 %v202_v43 }
  0x39   :  { %402 = vmatpush3.msra.mxu0 %v107_v24  ;;  %436 = vmatprep.subr.mxu1 %v586_v0  ;;  %p540_p4 = por %p539_p3, %p538_p2 }
  0x3a   :  { %403 = vmatprep.subr.mxu0 %v586_v0  ;;  %437 = vmatpush3.msra.mxu1 %v201_v44 }
  0x3b   :  { %404 = vmatpush3.msra.mxu0 %v106_v28  ;;  %438 = vmatprep.subr.mxu1 %v586_v0  ;;  %p541_p5 = pnand %p540_p4, %p534_p1 }
  0x3c   :  { %405 = vmatprep.subr.mxu0 %v586_v0  ;;  %439 = vmatpush3.msra.mxu1 %v200_v45 }
  0x3d   :  { %406 = vmatpush3.msra.mxu0 %v105_v33  ;;  %440 = vmatprep.subr.mxu1 %v586_v0 }
  0x3e   :  { %407 = vmatprep.subr.mxu0 %v586_v0  ;;  %441 = vmatpush3.msra.mxu1 %v199_v46 }
  0x3f   :  { %408 = vmatpush3.msra.mxu0 %v104_v35  ;;  %v98_v41 = vld [vmem:[#allocation2] sm:$0x3]  ;;  %442 = vmatprep.subr.mxu1 %v586_v0 }
  0x40   :  { %409 = vmatprep.subr.mxu0 %v586_v0  ;;  %v99_v42 = vmul.f32 0.125, %v98_v41  ;;  %443 = vmatpush3.msra.mxu1 %v198_v47 }
  0x41   :  { %410 = vmatpush3.msra.mxu0 %v103_v37  ;;  %444 = vmatprep.subr.mxu1 %v586_v0 }
  0x42   :  { %411 = vmatprep.subr.mxu0 %v586_v0  ;;  %445 = vmatpush3.msra.mxu1 %v197_v48 }
  0x43   :  { %412 = vmatpush3.msra.mxu0 %v102_v38  ;;  %446 = vmatprep.subr.mxu1 %v586_v0 }
  0x44   :  { %413 = vmatprep.subr.mxu0 %v586_v0  ;;  %447 = vmatpush3.msra.mxu1 %v196_v49 }
  0x45   :  { %414 = vmatpush3.msra.mxu0 %v101_v39  ;;  %448 = vmatprep.subr.mxu1 %v586_v0 }
  0x46   :  { %415 = vmatprep.subr.mxu0 %v586_v0  ;;  %449 = vmatpush3.msra.mxu1 %v195_v50 }
  0x47   :  { %416 = vmatpush3.msra.mxu0 %v100_v40  ;;  %450 = vmatprep.subr.mxu1 %v586_v0 }
  0x48   :  { %418 = vmatmul.mubr.f32.vlgmr.msra.gmra.mxu0 %v99_v42  ;;  %451 = vmatpush3.msra.mxu1 %v194_v51 }
  0x49   :  { %465 = vset.pattern.permute.xlu1 %v588_v3  ;;  %466 = vset.pattern.permute.xlu0 %v588_v3 }
  0x4a   :  { %307 = vperm.xlu1 %465, %v305_v2  }
  0xc5   :  { %v308_v10 = vpop.permute.xlu1 %307 }
  0xc6   :  { %vm309_vm4 = vcmp.eq.s32.totalorder %v289_v58, %v308_v10 }
  0xc7   :  { %v350_v13 = vsel %vm309_vm4, 1.0, %v586_v0 }
 0x108   :  { %v189_v53 = vpop.f32.mrf.mxu0 }
 0x109   :  { %v190_v54 = vadd.f32 %v348_v52, %v189_v53 }
 0x10a   :  { %v419_v55 = vpop.f32.mrf.mxu0 }
 0x10b   :  { %467 = vtanh.f32 %v190_v54 }
 0x118   :  { %v468_v56 = vpop.eup %467 }
 0x119   :  { %453 = vmatmul.mubr.f32.vlgmr.msra.gmra.mxu1 %v468_v56 }
 0x1d9   :  { %v283_v60 = vpop.f32.mrf.mxu1 }
 0x1da   :  { %v284_v61 = vadd.f32 %v349_v59, %v283_v60 }
 0x1db   :  { %v454_v62 = vpop.f32.mrf.mxu1 }
 0x1dc   :  { %287 = vst [vmem:[#allocation9] sm:$0x3] %v284_v61  ;;  %v291_v63 = vsel %vm290_vm2, %v284_v61, -1e+30 }
 0x1dd   :  { %v293_v1 = vsel %vm292_vm3, %v291_v63, -inf }
 0x1de   :  { %294 = vmax.xlane.f32.xlu0 %v293_v1 }
 0x267   :  { %v295_v4 = vpop.xlane.xlu0 %294 }
 0x268   :  { %v296_v5 = vsub.f32 %v291_v63, %v295_v4 }
 0x26a   :  { %v297_v6 = vmul.f32 1.442695, %v296_v5 }
 0x26c   :  { %469 = vpow2.f32 %v297_v6 }
 0x279   :  { %v470_v7 = vpop.eup %469 }
 0x27a   :  { %v299_v8 = vsel %vm292_vm3, %v470_v7, 0.0 }
 0x27b   :  { %300 = vadd.xlane.f32.xlu0 %v299_v8 }
 0x304   :  { %v301_v9 = vpop.xlane.xlu0 %300 }
 0x305   :  { %471 = vlog2.f32 %v301_v9 }
 0x312   :  { %v472_v11 = vpop.eup %471 }
 0x313   :  { %v303_v12 = vmul.f32 0.6931472, %v472_v11 }
 0x315   :  { %v304_v14 = vsub.f32 %v296_v5, %v303_v12 }
 0x317   :  { %v312_v15 = vmul.f32 %v350_v13, %v304_v14 }
 0x319   :  { %v313_v16 = vsel %vm292_vm3, %v312_v15, 0.0 }
 0x31a   :  { %314 = vadd.xlane.f32.xlu1 %v313_v16 }
 0x31b   :  { %544 = shalt.err (!%p541_p5)
}
 0x31c   :  { %327 = dma.vmem_to_hbm [thread:$0]  %s325_s5, 32, %s700_s6, [#allocation5]  }
 0x31d   :  { %s590_s23 = smov [#allocation10]  }
 0x31e   :  { %s334_s24 = sshll.u32 %s590_s23, 4  ;;  %s335_s24 = int_to_ptr.vmem [resolvable:$true] %s334_s24 }
 0x31f   :  { %s553_s25 = scalar_lea.vmem %s335_s24, 32  ;;  %p558_p7 = scmp.lt.s32.totalorder %s335_s24, %s335_s24 }
 0x320   :  { %p554_p6 = scmp.ne.s32.totalorder %s335_s24, %s553_s25  ;;  %p559_p8 = scmp.lt.s32.totalorder %s553_s25, %s553_s25 }
 0x322   :  { %p560_p9 = por %p559_p8, %p558_p7 }
 0x324   :  { %p561_p10 = pnand %p560_p9, %p554_p6 }
 0x3a3   :  { %v315_v0 = vpop.xlane.xlu1 %314 }
 0x3a4   :  { %v316_v17 = vsub.f32 0.0, %v315_v0 }
 0x3a6   :  { %317 = vst [vmem:[#allocation10] sm:$0x3] %v316_v17 }
 0x3a7   :  { %564 = shalt.err (!%p561_p10)
}
 0x3a8   :  { %337 = dma.vmem_to_hbm [thread:$0]  %s335_s24, 32, %s701_s7, [#allocation11]  }
 0x3a9   :  { %577 = dma.done.wait [#allocation5], 32  }
 0x3aa   :  { %578 = vsyncadd [#allocation5], 4294967264 }
 0x3ab   :  { %579 = dma.done.wait [#allocation11], 32  }
 0x3ac   :  { %580 = vsyncadd [#allocation11], 4294967264 }
 0x3ad   :  { %344 = vsyncpa [#allocation4], 1 }
 0x3ae   :  { %345 = vsyncpa [#allocation7], 1 }
 0x3af   :  { %346 = vsyncpa [#allocation5], 1 }
 0x3b0   :  { %347 = vsyncpa [#allocation11], 1 }

// kernel: tpu_custom_call.1
= control target key start
LH: loop header
LB: loop body
LE: loop exit
PB: predicated region body
PF: predicated region fallthrough
CT: control target
= control target key end

     0   :  { %13 = vsyncpa [#allocation4], 0  ;;  %s694_s0 = inlined_call_operand.hbm [shape: f32[2,8,128], index: 0, kind: input, shape index: {}]   ;;  %s695_s1 = inlined_call_operand.vmem [shape: s32[2,1], index: 1, kind: input, shape index: {}]   ;;  %s696_s2 = inlined_call_operand.hbm [shape: f32[128,128], index: 2, kind: input, shape index: {}]   ;;  %s697_s3 = inlined_call_operand.vmem [shape: f32[1,128], index: 3, kind: input, shape index: {}]   ;;  %s698_s4 = inlined_call_operand.hbm [shape: f32[128,128], index: 4, kind: input, shape index: {}]   ;;  %s699_s5 = inlined_call_operand.vmem [shape: f32[1,128], index: 5, kind: input, shape index: {}]   ;;  %s700_s6 = inlined_call_operand.hbm [shape: f32[2,128], index: 6, kind: output, shape index: {0}]   ;;  %s701_s7 = inlined_call_operand.hbm [shape: f32[2,128], index: 7, kind: output, shape index: {1}]  }
   0x1   :  { %14 = vsyncpa [#allocation7], 0 }
   0x2   :  { %15 = vsyncpa [#allocation5], 0 }
   0x3   :  { %16 = vsyncpa [#allocation11], 0  ;;  %s581_s24 = smov [#allocation6]   ;;  %s582_s26 = smov [#allocation3]  }
   0x4   :  { %s36_s25 = sshll.u32 %s581_s24, 4  ;;  %s22_s27 = sshll.u32 %s582_s26, 4  ;;  %s37_s25 = int_to_ptr.vmem [resolvable:$true] %s36_s25  ;;  %s23_s27 = int_to_ptr.vmem [resolvable:$true] %s22_s27 }
   0x5   :  { %s481_s28 = scalar_lea.vmem %s37_s25, 2048  ;;  %p486_p1 = scmp.lt.s32.totalorder %s37_s25, %s37_s25 }
   0x6   :  { %p482_p0 = scmp.ne.s32.totalorder %s37_s25, %s481_s28  ;;  %p487_p2 = scmp.lt.s32.totalorder %s481_s28, %s481_s28 }
   0x8   :  { %p488_p3 = por %p487_p2, %p486_p1 }
   0xa   :  { %p489_p4 = pnand %p488_p3, %p482_p0 }
   0xc   :  { %492 = shalt.err (!%p489_p4)
}
   0xd   :  { %s583_s29 = smov 128   ;;  %s584_s30 = smov 8  }
   0xe   :  { %42 = dma.hbm_to_vmem [thread:$0]  %s696_s2, 2048, %s37_s25, [#allocation7], %s583_s29, %s583_s29, %s584_s30  }
   0xf   :  { %s501_s10 = scalar_lea.vmem %s23_s27, 256  ;;  %p506_p6 = scmp.lt.s32.totalorder %s23_s27, %s23_s27 }
  0x10   :  { %p502_p5 = scmp.ne.s32.totalorder %s23_s27, %s501_s10  ;;  %p507_p7 = scmp.lt.s32.totalorder %s501_s10, %s501_s10 }
  0x12   :  { %p508_p8 = por %p507_p7, %p506_p6 }
  0x14   :  { %p509_p9 = pnand %p508_p8, %p502_p5 }
  0x16   :  { %512 = shalt.err (!%p509_p9)
}
  0x17   :  { %28 = dma.hbm_to_vmem [thread:$0]  %s694_s0, 256, %s23_s27, [#allocation4], %s583_s29, %s583_s29, %s584_s30  }
  0x18   :  { %s585_s13 = smov [#allocation8]  }
  0x19   :  { %s50_s14 = sshll.u32 %s585_s13, 4  ;;  %s51_s14 = int_to_ptr.vmem [resolvable:$true] %s50_s14 }
  0x1a   :  { %s521_s15 = scalar_lea.vmem %s51_s14, 2048  ;;  %p526_p11 = scmp.lt.s32.totalorder %s51_s14, %s51_s14 }
  0x1b   :  { %p522_p10 = scmp.ne.s32.totalorder %s51_s14, %s521_s15  ;;  %p527_p12 = scmp.lt.s32.totalorder %s521_s15, %s521_s15 }
  0x1d   :  { %p528_p13 = por %p527_p12, %p526_p11 }
  0x1f   :  { %p529_p0 = pnand %p528_p13, %p522_p10 }
  0x21   :  { %532 = shalt.err (!%p529_p0)
}
  0x22   :  { %56 = dma.hbm_to_vmem [thread:$0]  %s698_s4, 2048, %s51_s14, [#allocation7], %s583_s29, %s583_s29, %s584_s30  }
  0x23   :  { %573 = dma.done.wait [#allocation4], 256  }
  0x24   :  { %574 = vsyncadd [#allocation4], 4294967040 }
  0x25   :  { %575 = dma.done.wait [#allocation7], 4096  }
  0x26   :  { %576 = vsyncadd [#allocation7], 4294963200  ;;  %v586_v0 = vmov 0.0   ;;  %vm587_vm0 = vmmov 0   ;;  %v115_v1 = vld [vmem:[#allocation6 + $0x78] sm:$0xff]  ;;  %v114_v2 = vld [vmem:[#allocation6 + $0x70] sm:$0xff]  ;;  %v288_v57 = vlaneseq }
  0x27   :  { %385 = vmatprep.subr.mxu0 %v586_v0  ;;  %72 = vst [vmem:[#allocation2] sm:$0x3] %v586_v0  ;;  %417 = vmatprep.mubr.msk.f32.mxu0 %vm587_vm0, %v586_v0  ;;  %v113_v3 = vld [vmem:[#allocation6 + $0x68] sm:$0xff]  ;;  %v112_v4 = vld [vmem:[#allocation6 + $0x60] sm:$0xff]  ;;  %v111_v5 = vld [vmem:[#allocation6 + $0x58] sm:$0xff]  ;;  %vm90_vm1 = vcmask 1041409  }
  0x28   :  { %420 = vmatprep.subr.mxu1 %v586_v0  ;;  %452 = vmatprep.mubr.msk.f32.mxu1 %vm587_vm0, %v586_v0  ;;  %v74_v6 = vld [vmem:[#allocation3] sm:$0xff]  ;;  %v75_v7 = vld [vmem:[#allocation3 + $0x8] sm:$0xff]  ;;  %v207_v14 = vld [vmem:[#allocation8 + $0x68] sm:$0xff]  ;;  %v289_v58 = vand.u32 127, %v288_v57  ;;  %vm292_vm3 = vcmask 1041408  }
  0x29   :  { %386 = vmatpush3.msra.mxu0 %v115_v1  ;;  %v76_v8 = vrot.slane %v74_v6, 4  ;;  %v209_v9 = vld [vmem:[#allocation8 + $0x78] sm:$0xff]  ;;  %v208_v10 = vld [vmem:[#allocation8 + $0x70] sm:$0xff]  ;;  %v82_v11 = vrot.slane %v75_v7, 4  ;;  %v109_v16 = vld [vmem:[#allocation6 + $0x48] sm:$0xff] }
  0x2a   :  { %387 = vmatprep.subr.mxu0 %v586_v0  ;;  %421 = vmatpush3.msra.mxu1 %v209_v9  ;;  %v110_v12 = vld [vmem:[#allocation6 + $0x50] sm:$0xff]  ;;  %v206_v18 = vld [vmem:[#allocation8 + $0x60] sm:$0xff]  ;;  %v205_v22 = vld [vmem:[#allocation8 + $0x58] sm:$0xff]  ;;  %vm290_vm2 = vcmp.lt.s32.totalorder %v289_v58, 4 }
  0x2b   :  { %388 = vmatpush3.msra.mxu0 %v114_v2  ;;  %v77_v13 = vadd.f32 %v76_v8, %v74_v6  ;;  %422 = vmatprep.subr.mxu1 %v586_v0  ;;  %v83_v15 = vadd.f32 %v82_v11, %v75_v7  ;;  %v108_v20 = vld [vmem:[#allocation6 + $0x40] sm:$0xff]  ;;  %v107_v24 = vld [vmem:[#allocation6 + $0x38] sm:$0xff]  ;;  %v204_v26 = vld [vmem:[#allocation8 + $0x50] sm:$0xff] }
  0x2c   :  { %389 = vmatprep.subr.mxu0 %v586_v0  ;;  %423 = vmatpush3.msra.mxu1 %v208_v10  ;;  %v106_v28 = vld [vmem:[#allocation6 + $0x30] sm:$0xff]  ;;  %v203_v30 = vld [vmem:[#allocation8 + $0x48] sm:$0xff]  ;;  %v104_v35 = vld [vmem:[#allocation6 + $0x20] sm:$0xff] }
  0x2d   :  { %390 = vmatpush3.msra.mxu0 %v113_v3  ;;  %v78_v17 = vrot.slane %v77_v13, 2  ;;  %424 = vmatprep.subr.mxu1 %v586_v0  ;;  %v84_v19 = vrot.slane %v83_v15, 2  ;;  %v105_v33 = vld [vmem:[#allocation6 + $0x28] sm:$0xff]  ;;  %v103_v37 = vld [vmem:[#allocation6 + $0x18] sm:$0xff]  ;;  %v102_v38 = vld [vmem:[#allocation6 + $0x10] sm:$0xff]  ;;  %v588_v3 = vmov 0  }
  0x2e   :  { %391 = vmatprep.subr.mxu0 %v586_v0  ;;  %425 = vmatpush3.msra.mxu1 %v207_v14  ;;  %v73_v31 = vld [vmem:[#allocation2] sm:$0x3]  ;;  %v100_v40 = vld [vmem:[#allocation6] sm:$0xff]  ;;  %v201_v44 = vld [vmem:[#allocation8 + $0x38] sm:$0xff] }
  0x2f   :  { %392 = vmatpush3.msra.mxu0 %v112_v4  ;;  %v79_v21 = vadd.f32 %v78_v17, %v77_v13  ;;  %426 = vmatprep.subr.mxu1 %v586_v0  ;;  %v85_v23 = vadd.f32 %v84_v19, %v83_v15  ;;  %v101_v39 = vld [vmem:[#allocation6 + $0x8] sm:$0xff]  ;;  %v202_v43 = vld [vmem:[#allocation8 + $0x40] sm:$0xff]  ;;  %v200_v45 = vld [vmem:[#allocation8 + $0x30] sm:$0xff] }
  0x30   :  { %393 = vmatprep.subr.mxu0 %v586_v0  ;;  %427 = vmatpush3.msra.mxu1 %v206_v18  ;;  %v199_v46 = vld [vmem:[#allocation8 + $0x28] sm:$0xff]  ;;  %v198_v47 = vld [vmem:[#allocation8 + $0x20] sm:$0xff]  ;;  %v197_v48 = vld [vmem:[#allocation8 + $0x18] sm:$0xff] }
  0x31   :  { %394 = vmatpush3.msra.mxu0 %v111_v5  ;;  %v80_v25 = vrot.slane %v79_v21, 1  ;;  %428 = vmatprep.subr.mxu1 %v586_v0  ;;  %v86_v27 = vrot.slane %v85_v23, 1  ;;  %v196_v49 = vld [vmem:[#allocation8 + $0x10] sm:$0xff]  ;;  %v195_v50 = vld [vmem:[#allocation8 + $0x8] sm:$0xff]  ;;  %v194_v51 = vld [vmem:[#allocation8] sm:$0xff] }
  0x32   :  { %395 = vmatprep.subr.mxu0 %v586_v0  ;;  %429 = vmatpush3.msra.mxu1 %v205_v22  ;;  %v348_v52 = vld [vmem:[%s697_s3] ss:$0 sm:$0xff] }
  0x33   :  { %396 = vmatpush3.msra.mxu0 %v110_v12  ;;  %v81_v29 = vadd.f32 %v80_v25, %v79_v21  ;;  %430 = vmatprep.subr.mxu1 %v586_v0  ;;  %v87_v32 = vadd.f32 %v86_v27, %v85_v23  ;;  %v349_v59 = vld [vmem:[%s699_s5] ss:$0 sm:$0xff] }
  0x34   :  { %397 = vmatprep.subr.mxu0 %v586_v0  ;;  %431 = vmatpush3.msra.mxu1 %v204_v26  ;;  %v305_v2 = vld [vmem:[%s695_s1] sm:$0x3]  ;;  %s589_s1 = smov [#allocation9]  }
  0x35   :  { %398 = vmatpush3.msra.mxu0 %v109_v16  ;;  %432 = vmatprep.subr.mxu1 %v586_v0  ;;  %v91_v34 = vsel %vm90_vm1, %v87_v32, %v81_v29  ;;  %s324_s5 = sshll.u32 %s589_s1, 4  ;;  %s325_s5 = int_to_ptr.vmem [resolvable:$true] %s324_s5 }
  0x36   :  { %399 = vmatprep.subr.mxu0 %v586_v0  ;;  %433 = vmatpush3.msra.mxu1 %v203_v30  ;;  %v93_v36 = vadd.f32 %v91_v34, %v73_v31  ;;  %s533_s20 = scalar_lea.vmem %s325_s5, 32  ;;  %p538_p2 = scmp.lt.s32.totalorder %s325_s5, %s325_s5 }
  0x37   :  { %400 = vmatpush3.msra.mxu0 %v108_v20  ;;  %434 = vmatprep.subr.mxu1 %v586_v0  ;;  %p534_p1 = scmp.ne.s32.totalorder %s325_s5, %s533_s20  ;;  %p539_p3 = scmp.lt.s32.totalorder %s533_s20, %s533_s20 }
  0x38   :  { %401 = vmatprep.subr.mxu0 %v586_v0  ;;  %94 = vst [vmem:[#allocation2] sm:$0x3] %v93_v36  ;;  %435 = vmatpush3.msra.mxu1 %v202_v43 }
  0x39   :  { %402 = vmatpush3.msra.mxu0 %v107_v24  ;;  %436 = vmatprep.subr.mxu1 %v586_v0  ;;  %p540_p4 = por %p539_p3, %p538_p2 }
  0x3a   :  { %403 = vmatprep.subr.mxu0 %v586_v0  ;;  %437 = vmatpush3.msra.mxu1 %v201_v44 }
  0x3b   :  { %404 = vmatpush3.msra.mxu0 %v106_v28  ;;  %438 = vmatprep.subr.mxu1 %v586_v0  ;;  %p541_p5 = pnand %p540_p4, %p534_p1 }
  0x3c   :  { %405 = vmatprep.subr.mxu0 %v586_v0  ;;  %439 = vmatpush3.msra.mxu1 %v200_v45 }
  0x3d   :  { %406 = vmatpush3.msra.mxu0 %v105_v33  ;;  %440 = vmatprep.subr.mxu1 %v586_v0 }
  0x3e   :  { %407 = vmatprep.subr.mxu0 %v586_v0  ;;  %441 = vmatpush3.msra.mxu1 %v199_v46 }
  0x3f   :  { %408 = vmatpush3.msra.mxu0 %v104_v35  ;;  %v98_v41 = vld [vmem:[#allocation2] sm:$0x3]  ;;  %442 = vmatprep.subr.mxu1 %v586_v0 }
  0x40   :  { %409 = vmatprep.subr.mxu0 %v586_v0  ;;  %v99_v42 = vmul.f32 0.125, %v98_v41  ;;  %443 = vmatpush3.msra.mxu1 %v198_v47 }
  0x41   :  { %410 = vmatpush3.msra.mxu0 %v103_v37  ;;  %444 = vmatprep.subr.mxu1 %v586_v0 }
  0x42   :  { %411 = vmatprep.subr.mxu0 %v586_v0  ;;  %445 = vmatpush3.msra.mxu1 %v197_v48 }
  0x43   :  { %412 = vmatpush3.msra.mxu0 %v102_v38  ;;  %446 = vmatprep.subr.mxu1 %v586_v0 }
  0x44   :  { %413 = vmatprep.subr.mxu0 %v586_v0  ;;  %447 = vmatpush3.msra.mxu1 %v196_v49 }
  0x45   :  { %414 = vmatpush3.msra.mxu0 %v101_v39  ;;  %448 = vmatprep.subr.mxu1 %v586_v0 }
  0x46   :  { %415 = vmatprep.subr.mxu0 %v586_v0  ;;  %449 = vmatpush3.msra.mxu1 %v195_v50 }
  0x47   :  { %416 = vmatpush3.msra.mxu0 %v100_v40  ;;  %450 = vmatprep.subr.mxu1 %v586_v0 }
  0x48   :  { %418 = vmatmul.mubr.f32.vlgmr.msra.gmra.mxu0 %v99_v42  ;;  %451 = vmatpush3.msra.mxu1 %v194_v51 }
  0x49   :  { %465 = vset.pattern.permute.xlu1 %v588_v3  ;;  %466 = vset.pattern.permute.xlu0 %v588_v3 }
  0x4a   :  { %307 = vperm.xlu1 %465, %v305_v2  }
  0xc5   :  { %v308_v10 = vpop.permute.xlu1 %307 }
  0xc6   :  { %vm309_vm4 = vcmp.eq.s32.totalorder %v289_v58, %v308_v10 }
  0xc7   :  { %v350_v13 = vsel %vm309_vm4, 1.0, %v586_v0 }
 0x108   :  { %v189_v53 = vpop.f32.mrf.mxu0 }
 0x109   :  { %v190_v54 = vadd.f32 %v348_v52, %v189_v53 }
 0x10a   :  { %v419_v55 = vpop.f32.mrf.mxu0 }
 0x10b   :  { %467 = vtanh.f32 %v190_v54 }
 0x118   :  { %v468_v56 = vpop.eup %467 }
 0x119   :  { %453 = vmatmul.mubr.f32.vlgmr.msra.gmra.mxu1 %v468_v56 }
 0x1d9   :  { %v283_v60 = vpop.f32.mrf.mxu1 }
 0x1da   :  { %v284_v61 = vadd.f32 %v349_v59, %v283_v60 }
 0x1db   :  { %v454_v62 = vpop.f32.mrf.mxu1 }
 0x1dc   :  { %287 = vst [vmem:[#allocation9] sm:$0x3] %v284_v61  ;;  %v291_v63 = vsel %vm290_vm2, %v284_v61, -1e+30 }
 0x1dd   :  { %v293_v1 = vsel %vm292_vm3, %v291_v63, -inf }
 0x1de   :  { %294 = vmax.xlane.f32.xlu0 %v293_v1 }
 0x267   :  { %v295_v4 = vpop.xlane.xlu0 %294 }
 0x268   :  { %v296_v5 = vsub.f32 %v291_v63, %v295_v4 }
 0x26a   :  { %v297_v6 = vmul.f32 1.442695, %v296_v5 }
 0x26c   :  { %469 = vpow2.f32 %v297_v6 }
 0x279   :  { %v470_v7 = vpop.eup %469 }
 0x27a   :  { %v299_v8 = vsel %vm292_vm3, %v470_v7, 0.0 }
 0x27b   :  { %300 = vadd.xlane.f32.xlu0 %v299_v8 }
 0x304   :  { %v301_v9 = vpop.xlane.xlu0 %300 }
 0x305   :  { %471 = vlog2.f32 %v301_v9 }
 0x312   :  { %v472_v11 = vpop.eup %471 }
 0x313   :  { %v303_v12 = vmul.f32 0.6931472, %v472_v11 }
 0x315   :  { %v304_v14 = vsub.f32 %v296_v5, %v303_v12 }
 0x317   :  { %v312_v15 = vmul.f32 %v350_v13, %v304_v14 }
 0x319   :  { %v313_v16 = vsel %vm292_vm3, %v312_v15, 0.0 }
 0x31a   :  { %314 = vadd.xlane.f32.xlu1 %v313_v16 }
 0x31b   :  { %544 = shalt.err (!%p541_p5)
}
 0x31c   :  { %327 = dma.vmem_to_hbm [thread:$0]  %s325_s5, 32, %s700_s6, [#allocation5]  }
 0x31d   :  { %s590_s23 = smov [#allocation10]  }
 0x31e   :  { %s334_s24 = sshll.u32 %s590_s23, 4  ;;  %s335_s24 = int_to_ptr.vmem [resolvable:$true] %s334_s24 }
 0x31f   :  { %s553_s25 = scalar_lea.vmem %s335_s24, 32  ;;  %p558_p7 = scmp.lt.s32.totalorder %s335_s24, %s335_s24 }
 0x320   :  { %p554_p6 = scmp.ne.s32.totalorder %s335_s24, %s553_s25  ;;  %p559_p8 = scmp.lt.s32.totalorder %s553_s25, %s553_s25 }
 0x322   :  { %p560_p9 = por %p559_p8, %p558_p7 }
 0x324   :  { %p561_p10 = pnand %p560_p9, %p554_p6 }
 0x3a3   :  { %v315_v0 = vpop.xlane.xlu1 %314 }
 0x3a4   :  { %v316_v17 = vsub.f32 0.0, %v315_v0 }
 0x3a6   :  { %317 = vst [vmem:[#allocation10] sm:$0x3] %v316_v17 }
 0x3a7   :  { %564 = shalt.err (!%p561_p10)
}
 0x3a8   :  { %337 = dma.vmem_to_hbm [thread:$0]  %s335_s24, 32, %s701_s7, [#allocation11]  }
 0x3a9   :  { %577 = dma.done.wait [#allocation5], 32  }
 0x3aa   :  { %578 = vsyncadd [#allocation5], 4294967264 }
 0x3ab   :  { %579 = dma.done.wait [#allocation11], 32  }
 0x3ac   :  { %580 = vsyncadd [#allocation11], 4294967264 }
 0x3ad   :  { %344 = vsyncpa [#allocation4], 1 }
 0x3ae   :  { %345 = vsyncpa [#allocation7], 1 }
 0x3af   :  { %346 = vsyncpa [#allocation5], 1 }
 0x3b0   :  { %347 = vsyncpa [#allocation11], 1 }

</bundles_post_ra>
